<compile_context>
chip_gen: v6e
topology: v6e:2x2x1
jax: 0.10.0
libtpu: 0.0.40
codegen_flags: <defaults>
</compile_context>

<pallas_src>
import jax
import jax.numpy as jnp
from jax import lax
from jax.experimental import pallas as pl
from jax.experimental.pallas import tpu as pltpu


def _choose_tn(N, bytes_per_row, target_bytes):
    """Rows per grid step: prefer a multiple-of-8 divisor of N (no tail mask)."""
    target_rows = max(1, target_bytes // max(1, bytes_per_row))
    if target_rows >= N:
        return N                                   # single block (TN == N is always legal)
    t = (target_rows // 8) * 8
    if t < 8:                                      # very wide rows: smallest aligned tile
        return N if N <= 8 else 8
    lo = max(8, ((t // 2) // 8) * 8)               # accept down to ~half the byte target
    for cand in range(t, lo - 1, -8):
        if N % cand == 0:
            return cand                            # mask-free reduction sweep
    return t                                       # masked tail, handled once under pl.when


def _make_kernel(N, TN, M, grid_n_total, needs_mask, k_pref):
    def _staged_sum(x):
        # x: (R, M) -> (1, M) f32.  kk independent partial accumulators expose
        # ILP so the add chain hides under the tile's DMA; widening accumulation
        # (dtype=f32) folds the upcast into the reduction instead of
        # materializing a full f32 copy of the tile.
        R = x.shape[0]
        sub = 8 * max(1, 4 // jnp.dtype(x.dtype).itemsize)  # sublane packing unit
        kk = k_pref
        while kk > 1 and not (R % kk == 0 and (R // kk) % sub == 0):
            kk //= 2
        if kk > 1:
            xr = x.reshape(kk, R // kk, x.shape[1])
            part = jnp.sum(xr, axis=1, dtype=jnp.float32)           # kk independent chains
            return jnp.sum(part, axis=0, keepdims=True, dtype=jnp.float32)
        return jnp.sum(x, axis=0, keepdims=True, dtype=jnp.float32)

    def kernel(x_ref, o_ref):
        # x_ref: (TN, M) input tile; o_ref: (1, 1, M) f32, resident across n.
        p = pl.program_id(0)
        n = pl.program_id(1)
        g = p * pl.num_programs(1) + n             # global block index along N

        def accumulate(partial):                   # partial: (1, M) f32
            # First block of this part writes directly (no zero-init pass).
            @pl.when(n == 0)
            def _():
                o_ref[0] = partial

            @pl.when(n > 0)
            def _():
                o_ref[0] += partial

        if needs_mask:
            in_bounds = (g + 1) * TN <= N

            @pl.when(in_bounds)
            def _():
                accumulate(_staged_sum(x_ref[...]))

            @pl.when(jnp.logical_not(in_bounds))
            def _():
                # Tail (or padding) block: zero the out-of-range rows, whose
                # VMEM contents are undefined after the clamped DMA.  Runs at
                # most once per reduction sweep, so it stays off the hot path.
                valid = N - g * TN                 # may be <= 0 for padding blocks
                rows = lax.broadcasted_iota(jnp.int32, (TN, 1), 0)
                xm = jnp.where(rows < valid, x_ref[...].astype(jnp.float32), 0.0)
                accumulate(_staged_sum(xm))
        else:
            accumulate(_staged_sum(x_ref[...]))

    return kernel


def agg_sum(x: jax.Array, *, target_tile_bytes: int = 8 * 1024 * 1024) -> jax.Array:
    """x: (N, S, H) -> (1, H, S)   == torch: x.sum(0, True).transpose(2, 1)"""
    N, S, H = x.shape
    M = S * H
    itemsize = jnp.dtype(x.dtype).itemsize

    # Lane-dense 2-D view: N on sublanes (reduction axis), S*H on lanes.
    x2 = x.reshape(N, M)

    bytes_per_row = M * itemsize
    TN = _choose_tn(N, bytes_per_row, target_tile_bytes)
    grid_n_total = -(-N // TN)

    # Split the reduction axis over a leading parallel axis (P partial sums).
    P = 2 if grid_n_total >= 2 else 1
    grid_n = -(-grid_n_total // P)
    needs_mask = (P * grid_n * TN) != N

    # ILP factor for the in-tile reduction (only when the f32 slab is small
    # enough that a single serial add chain would dominate the tile's DMA).
    slab_bytes = M * 4
    if slab_bytes <= 16 * 1024:
        k_pref = 8
    elif slab_bytes <= 64 * 1024:
        k_pref = 4
    elif slab_bytes <= 256 * 1024:
        k_pref = 2
    else:
        k_pref = 1

    def in_index_map(p, n):
        g = p * grid_n + n
        if needs_mask:
            # Padding blocks (only when grid_n_total is odd) re-read the last
            # valid block; the kernel masks their contribution to zero.
            g = jnp.minimum(g, grid_n_total - 1)
        return (g, 0)

    kernel = _make_kernel(N, TN, M, grid_n_total, needs_mask, k_pref)

    # VMEM budget: 2x double-buffered input tile + 2x sublane-padded output
    # slab + 25% headroom, derived from the actual tile sizes.
    m_pad = -(-M // 128) * 128
    tn_pad = -(-TN // 8) * 8
    need = 2 * tn_pad * m_pad * itemsize + 2 * 8 * m_pad * 4
    vmem_limit = int(min(max((need * 5) // 4 + (1 << 20), 8 << 20), 100 << 20))

    out = pl.pallas_call(
        kernel,
        out_shape=jax.ShapeDtypeStruct((P, 1, M), jnp.float32),
        grid_spec=pltpu.PrefetchScalarGridSpec(
            num_scalar_prefetch=0,
            grid=(P, grid_n),                      # reduction axis last
            in_specs=[pl.BlockSpec((TN, M), in_index_map)],
            out_specs=pl.BlockSpec((1, 1, M), lambda p, n: (p, 0, 0)),
        ),
        compiler_params=pltpu.CompilerParams(
            dimension_semantics=("parallel", "arbitrary"),
            vmem_limit_bytes=vmem_limit,
        ),
    )(x2)

    # Tiny XLA epilogue: combine the P partial sums (S*H adds), restore (S, H)
    # and do the (S, H) -> (H, S) swap, cast back to the input dtype.
    total = out.reshape(P, S, H)
    total = total[0] if P == 1 else jnp.sum(total, axis=0)
    return jnp.swapaxes(total, 0, 1)[None].astype(x.dtype)


if __name__ == "__main__":
    key = jax.random.PRNGKey(0)

    # Small shape consistent with the module: batch=2 (reduced), seq=8, hidden=32.
    N, S, H = 2, 8, 32
    x = jax.random.normal(key, (N, S, H), dtype=jnp.float32)
    out = jax.block_until_ready(agg_sum(x))
    ref = jnp.swapaxes(jnp.sum(x, axis=0, keepdims=True), 1, 2)
    assert out.shape == (1, H, S), out.shape
    assert out.dtype == x.dtype
    assert jnp.allclose(out, ref, atol=1e-5, rtol=1e-5), "mismatch vs reference (base)"

    k1, k2, k3 = jax.random.split(key, 3)

    # Multi-block reduction + 2-way N split + masked tail / padding block.
    x2 = jax.random.normal(k1, (37, 8, 32), dtype=jnp.float32)
    o2 = jax.block_until_ready(agg_sum(x2, target_tile_bytes=4096))
    r2 = jnp.swapaxes(jnp.sum(x2, axis=0, keepdims=True), 1, 2)
    assert jnp.allclose(o2, r2, atol=1e-4, rtol=1e-5), "mismatch vs reference (masked tail)"

    # Mask-free divisor tiling + staged (ILP) in-tile reduction + 2-way split.
    x3 = jax.random.normal(k2, (64, 8, 16), dtype=jnp.float32)
    o3 = jax.block_until_ready(agg_sum(x3, target_tile_bytes=8192))
    r3 = jnp.swapaxes(jnp.sum(x3, axis=0, keepdims=True), 1, 2)
    assert jnp.allclose(o3, r3, atol=1e-4, rtol=1e-5), "mismatch vs reference (staged)"

    # Non-f32 input dtype: f32 accumulation inside, cast on the way out.
    x4 = jax.random.normal(k3, (2, 8, 32), dtype=jnp.bfloat16)
    o4 = jax.block_until_ready(agg_sum(x4))
    r4 = jnp.swapaxes(jnp.sum(x4.astype(jnp.float32), axis=0, keepdims=True), 1, 2)
    assert o4.dtype == jnp.bfloat16
    assert jnp.allclose(o4.astype(jnp.float32), r4, atol=2e-2, rtol=2e-2), "mismatch (bf16)"

    print("KERNEL_OK")
</pallas_src>

<mosaic_0001>
module attributes {stable_mosaic.version = 11 : i64} {
  func.func @kernel(%arg0: i32, %arg1: i32, %arg2: memref<2x256xf32, #tpu.memory_space<vmem>>, %arg3: memref<1x1x256xf32, #tpu.memory_space<vmem>>) attributes {dimension_semantics = [#tpu.dimension_semantics<parallel>, #tpu.dimension_semantics<arbitrary>], iteration_bounds = array<i64: 1, 1>, scalar_prefetch = 0 : i64, scratch_operands = 0 : i64, tpu.core_type = #tpu.core_type<tc>, window_params = [{transform_indices = @transform_0, window_bounds = array<i64: 2, 256>}, {transform_indices = @transform_1, window_bounds = array<i64: 1, 1, 256>}]} {
    %c0 = arith.constant 0 : index
    %c0_0 = arith.constant 0 : index
    %0 = vector.load %arg2[%c0, %c0_0] : memref<2x256xf32, #tpu.memory_space<vmem>>, vector<2x256xf32>
    %cst = arith.constant dense<0.000000e+00> : vector<256xf32>
    %1 = vector.multi_reduction <add>, %0, %cst [0] : vector<2x256xf32> to vector<256xf32>
    %2 = vector.shape_cast %1 : vector<256xf32> to vector<1x256xf32>
    %c0_i32 = arith.constant 0 : i32
    %3 = arith.cmpi eq, %arg1, %c0_i32 : i32
    %4 = arith.extui %3 : i1 to i32
    %c0_i32_1 = arith.constant 0 : i32
    %5 = arith.cmpi ne, %4, %c0_i32_1 : i32
    scf.if %5 {
      %c0_4 = arith.constant 0 : index
      %c0_5 = arith.constant 0 : index
      %c0_6 = arith.constant 0 : index
      %9 = vector.load %arg3[%c0_4, %c0_5, %c0_6] : memref<1x1x256xf32, #tpu.memory_space<vmem>>, vector<1x1x256xf32>
      %10 = vector.shape_cast %9 : vector<1x1x256xf32> to vector<1x256xf32>
      %11 = vector.shape_cast %2 : vector<1x256xf32> to vector<1x1x256xf32>
      tpu.vector_store %arg3[%c0_4, %c0_5, %c0_6], %11 {strides = array<i32>} : memref<1x1x256xf32, #tpu.memory_space<vmem>>, vector<1x1x256xf32>,
    } else {
    }
    %c0_i32_2 = arith.constant 0 : i32
    %6 = arith.cmpi sgt, %arg1, %c0_i32_2 : i32
    %7 = arith.extui %6 : i1 to i32
    %c0_i32_3 = arith.constant 0 : i32
    %8 = arith.cmpi ne, %7, %c0_i32_3 : i32
    scf.if %8 {
      %c0_4 = arith.constant 0 : index
      %c0_5 = arith.constant 0 : index
      %c0_6 = arith.constant 0 : index
      %9 = vector.load %arg3[%c0_4, %c0_5, %c0_6] : memref<1x1x256xf32, #tpu.memory_space<vmem>>, vector<1x1x256xf32>
      %10 = vector.shape_cast %9 : vector<1x1x256xf32> to vector<1x256xf32>
      %11 = arith.addf %10, %2 : vector<1x256xf32>
      %c0_7 = arith.constant 0 : index
      %c0_8 = arith.constant 0 : index
      %c0_9 = arith.constant 0 : index
      %12 = vector.load %arg3[%c0_7, %c0_8, %c0_9] : memref<1x1x256xf32, #tpu.memory_space<vmem>>, vector<1x1x256xf32>
      %13 = vector.shape_cast %12 : vector<1x1x256xf32> to vector<1x256xf32>
      %14 = vector.shape_cast %11 : vector<1x256xf32> to vector<1x1x256xf32>
      tpu.vector_store %arg3[%c0_7, %c0_8, %c0_9], %14 {strides = array<i32>} : memref<1x1x256xf32, #tpu.memory_space<vmem>>, vector<1x1x256xf32>,
    } else {
    }
    return
  }
  func.func @transform_0(%arg0: i32, %arg1: i32) -> (i32, i32) {
    %c1_i32 = arith.constant 1 : i32
    %0 = arith.muli %arg0, %c1_i32 : i32
    %1 = arith.addi %0, %arg1 : i32
    %c0_i32 = arith.constant 0 : i32
    %c0_i32_0 = arith.constant 0 : i32
    return %1, %c0_i32 : i32, i32
  }
  func.func @transform_1(%arg0: i32, %arg1: i32) -> (i32, i32, i32) {
    %c0_i32 = arith.constant 0 : i32
    %c0_i32_0 = arith.constant 0 : i32
    %c0_i32_1 = arith.constant 0 : i32
    return %arg0, %c0_i32, %c0_i32_0 : i32, i32, i32
  }
}

</mosaic_0001>

<bundles_post_ra>
// kernel: tpu_custom_call.1
= control target key start
LH: loop header
LB: loop body
LE: loop exit
PB: predicated region body
PF: predicated region fallthrough
CT: control target
= control target key end

     0   :  { %6 = vsyncpa [#allocation3], 0  ;;  %s191_s0 = inlined_call_operand.hbm [shape: f32[2,256], index: 0, kind: input, shape index: {}]   ;;  %s192_s1 = inlined_call_operand.hbm [shape: f32[1,1,256], index: 1, kind: output, shape index: {}]  }
   0x1   :  { %7 = vsyncpa [#allocation4], 0  ;;  %s172_s6 = smov [#allocation2]  }
   0x2   :  { %s18_s7 = sshll.u32 %s172_s6, 4  ;;  %s19_s7 = int_to_ptr.vmem [resolvable:$true] %s18_s7 }
   0x3   :  { %s136_s8 = scalar_lea.vmem %s19_s7, 64  ;;  %p141_p1 = scmp.lt.s32.totalorder %s19_s7, %s19_s7 }
   0x4   :  { %p137_p0 = scmp.ne.s32.totalorder %s19_s7, %s136_s8  ;;  %p142_p2 = scmp.lt.s32.totalorder %s136_s8, %s136_s8 }
   0x6   :  { %p143_p3 = por %p142_p2, %p141_p1 }
   0x8   :  { %p144_p4 = pnand %p143_p3, %p137_p0 }
   0xa   :  { %147 = shalt.err (!%p144_p4)
}
   0xb   :  { %21 = dma.hbm_to_vmem [thread:$0]  %s191_s0, 64, %s19_s7, [#allocation3]  }
   0xc   :  { %168 = dma.done.wait [#allocation3], 64  }
   0xd   :  { %169 = vsyncadd [#allocation3], 4294967232  ;;  %vm38_vm0 = vcmask 1041408   ;;  %v173_v9 = vmov 1966171168   ;;  %v63_v11 = vlaneseq  ;;  %s174_s0 = smov [#allocation5]  }
   0xe   :  { %v124_v0 = vld.sshfl [vmem:[#allocation2] sm:$0x33 pattern:$0x76325410]  ;;  %v61_v10 = vunpack.c.l.s4 %v173_v9  ;;  %s115_s11 = sshll.u32 %s174_s0, 4  ;;  %s116_s11 = int_to_ptr.vmem [resolvable:$true] %s115_s11 }
   0xf   :  { %v35_v1 = vcombine.high %v124_v0, %v124_v0  ;;  %v39_v2 = vsel %vm38_vm0, %v124_v0, 0.0  ;;  %v64_v17 = vshrl.u32 %v63_v11, 7  ;;  %vm77_vm1 = vcmp.lt.s32.totalorder %v63_v11, 256  ;;  %s148_s12 = scalar_lea.vmem %s116_s11, 32  ;;  %p153_p6 = scmp.lt.s32.totalorder %s116_s11, %s116_s11 }
  0x10   :  { %v40_v3 = vrot.slane %v39_v2, 4  ;;  %v62_v16 = vunpack.c.0.s8 %v61_v10  ;;  %p149_p5 = scmp.ne.s32.totalorder %s116_s11, %s148_s12  ;;  %p154_p7 = scmp.lt.s32.totalorder %s148_s12, %s148_s12 }
  0x11   :  { %v46_v4 = vsel %vm38_vm0, %v35_v1, 0.0 }
  0x12   :  { %v41_v5 = vadd.f32 %v40_v3, %v39_v2  ;;  %v47_v6 = vrot.slane %v46_v4, 4  ;;  %v65_v21 = vsub.s32 %v62_v16, %v64_v17  ;;  %p155_p8 = por %p154_p7, %p153_p6 }
  0x14   :  { %v42_v7 = vrot.slane %v41_v5, 2  ;;  %v48_v8 = vadd.f32 %v47_v6, %v46_v4  ;;  %p156_p9 = pnand %p155_p8, %p149_p5 }
  0x16   :  { %v43_v12 = vadd.f32 %v42_v7, %v41_v5  ;;  %v49_v13 = vrot.slane %v48_v8, 2 }
  0x18   :  { %v44_v14 = vrot.slane %v43_v12, 1  ;;  %v50_v15 = vadd.f32 %v49_v13, %v48_v8 }
  0x1a   :  { %v45_v18 = vadd.f32 %v44_v14, %v43_v12  ;;  %v51_v19 = vrot.slane %v50_v15, 1 }
  0x1c   :  { %v52_v20 = vadd.f32 %v51_v19, %v50_v15 }
  0x1e   :  { %v59_v22 = vcombine.low %v45_v18, %v52_v20 }
  0x20   :  { %v66_v23 = vrot.slane %v59_v22, %v65_v21 }
  0x22   :  { %v73_v24 = vrot.slane %v66_v23, %v65_v21 }
  0x24   :  { %79 = vst.msk [vmem:[#allocation5] sm:$0x3] %vm77_vm1, %v73_v24 }
  0x25   :  { %159 = shalt.err (!%p156_p9)
}
  0x26   :  { %118 = dma.vmem_to_hbm [thread:$0]  %s116_s11, 32, %s192_s1, [#allocation4]  }
  0x27   :  { %170 = dma.done.wait [#allocation4], 32  }
  0x28   :  { %171 = vsyncadd [#allocation4], 4294967264 }
  0x29   :  { %122 = vsyncpa [#allocation3], 1 }
  0x2a   :  { %123 = vsyncpa [#allocation4], 1 }

</bundles_post_ra>
